<compile_context>
chip_gen: v5e
topology: v5e:2x2
jax: 0.10.0
libtpu: 0.0.40
codegen_flags: <defaults>
</compile_context>

<pallas_src>
import jax
import jax.numpy as jnp
from jax import lax
from jax.experimental import pallas as pl
from jax.experimental.pallas import tpu as pltpu

HPAD = 128      # hidden lane padding (native TPU lane width)
MAX_TB = 2048   # max batch-tile rows (multiple of 128)


def _round_up(n, m):
    return ((n + m - 1) // m) * m


def _pad2(a, rows, cols):
    a = jnp.asarray(a, jnp.float32)
    return jnp.pad(a, ((0, rows - a.shape[0]), (0, cols - a.shape[1])))


def _choose_tb(batch_rows):
    """Pick batch tile TB (multiple of 128).

    Keeps >= 2 grid steps when possible (v7x megacore sharding) and balances
    padded-row waste against per-grid-step fixed overhead (~64 rows' worth).
    """
    b128 = _round_up(max(batch_rows, 1), 128)
    n_tiles = b128 // 128
    if n_tiles <= 1:
        return 128
    cap_tiles = min(MAX_TB // 128, max(1, n_tiles // 2))   # grid length >= 2
    best_tb, best_cost = 128, None
    for t in range(cap_tiles, 0, -1):
        tb = t * 128
        b_pad = _round_up(b128, tb)
        steps = b_pad // tb
        cost = (b_pad - b128) + 64 * steps
        if best_cost is None or cost < best_cost:
            best_cost, best_tb = cost, tb
    return best_tb


def score_network_kernel(xin_ref, w1_ref, w2_ref, b2_ref, w3t_ref, b3t_ref,
                         out_ref):
    w2 = w2_ref[...]
    w3t = w3t_ref[...]
    # Layer 1 (fused): single (TB, 8) x (8, 128) MXU pass; the constant-1
    # input column applies b1.  Always f32 (K is tiny).
    h = jnp.tanh(jnp.dot(xin_ref[...], w1_ref[...],
                         preferred_element_type=jnp.float32))
    # Layer 2: (TB, 128) x (128, 128); operands may be bf16, f32 accumulate.
    h = jnp.tanh(jnp.dot(h.astype(w2.dtype), w2,
                         preferred_element_type=jnp.float32) + b2_ref[...])
    # Layer 3 (final, no activation), emitted transposed as (OUT_PAD, TB):
    #   out_t = W3^T @ h^T  via dot_general contracting the last dims.
    out_t = lax.dot_general(
        w3t, h.astype(w3t.dtype),
        dimension_numbers=(((1,), (1,)), ((), ())),
        preferred_element_type=jnp.float32) + b3t_ref[...]
    out_ref[...] = out_t.astype(out_ref.dtype)


def pack_params(params):
    """Pack (in,out)-layout weights: fuse [W1;b1], transpose W3, pad to lanes."""
    w1, b1, w2, b2, w3, b3 = params
    in_dim = w1.shape[0]
    out_dim = w3.shape[1]
    k1 = max(8, _round_up(in_dim + 1, 8))
    out_pad = _round_up(out_dim, 8)
    w1f = jnp.concatenate([jnp.asarray(w1, jnp.float32),
                           jnp.asarray(b1, jnp.float32)], axis=0)  # [W1 ; b1]
    packed = (
        _pad2(w1f, k1, HPAD),                                # (8, 128)
        _pad2(w2, HPAD, HPAD),                               # (128, 128)
        _pad2(b2, 1, HPAD),                                  # (1, 128)
        _pad2(jnp.asarray(w3, jnp.float32).T, out_pad, HPAD),  # (8, 128)
        _pad2(jnp.asarray(b3, jnp.float32).T, out_pad, 1),     # (8, 1)
    )
    return packed, out_dim


def score_network_forward(x_input, t, packed, out_dim, *, use_bf16_matmul=False):
    """x_input: (B, x_dim), t: (B, t_dim). Returns (B, out_dim) float32."""
    w1f, w2, b2, w3t, b3t = packed
    x_input = jnp.asarray(x_input, jnp.float32)
    t = jnp.asarray(t, jnp.float32)
    B = x_input.shape[0]
    in_dim = x_input.shape[1] + t.shape[1]
    k1 = w1f.shape[0]
    out_pad = w3t.shape[0]

    # Fused layer-1 input [x | t | 1], zero-padded to k1 lanes and TB rows.
    xin = jnp.concatenate([x_input, t, jnp.ones((B, 1), jnp.float32)], axis=1)
    TB = _choose_tb(B)
    B_pad = _round_up(B, TB)
    xin = jnp.pad(xin, ((0, B_pad - B), (0, k1 - (in_dim + 1))))

    if use_bf16_matmul:
        w2 = w2.astype(jnp.bfloat16)
        w3t = w3t.astype(jnp.bfloat16)

    def resident(arr):
        # Constant block index -> weight stays VMEM-resident across grid steps.
        return pl.BlockSpec(arr.shape, lambda i: (0, 0))

    out_t = pl.pallas_call(
        score_network_kernel,
        out_shape=jax.ShapeDtypeStruct((out_pad, B_pad), jnp.float32),
        grid=(B_pad // TB,),
        in_specs=[
            pl.BlockSpec((TB, k1), lambda i: (i, 0)),   # fused input tile
            resident(w1f),
            resident(w2),
            resident(b2),
            resident(w3t),
            resident(b3t),
        ],
        out_specs=pl.BlockSpec((out_pad, TB), lambda i: (0, i)),
        compiler_params=pltpu.CompilerParams(
            dimension_semantics=("parallel",)),
    )(xin, w1f, w2, b2, w3t, b3t)

    return out_t[:out_dim, :B].T


def init_params(key, input_dim, layer_widths=(100, 100, 2)):
    """Deterministic init mimicking PyTorch Linear default (U[-1/sqrt(fan_in), ...])."""
    params = []
    prev = input_dim
    for width in layer_widths:
        key, kw, kb = jax.random.split(key, 3)
        bound = 1.0 / jnp.sqrt(prev)
        w = jax.random.uniform(kw, (prev, width), jnp.float32, -bound, bound)
        b = jax.random.uniform(kb, (1, width), jnp.float32, -bound, bound)
        params += [w, b]
        prev = width
    return tuple(params)


if __name__ == "__main__":
    key = jax.random.PRNGKey(0)
    k_x, k_t, k_p, k_x2, k_t2 = jax.random.split(key, 5)

    # Small DSBM-Gaussian-style shapes: 2-D data + scalar time feature.
    x_dim, t_dim = 2, 1
    layer_widths = (100, 100, 2)
    input_dim = x_dim + t_dim

    params = init_params(k_p, input_dim, layer_widths)
    packed, out_dim = pack_params(params)

    def ref_forward(x, tt):
        w1, b1, w2, b2, w3, b3 = params
        inp = jnp.concatenate([x, tt], axis=1)
        h = jnp.tanh(inp @ w1 + b1)
        h = jnp.tanh(h @ w2 + b2)
        return h @ w3 + b3

    # Case 1: small batch, f32 matmuls (tight reference check).
    B = 8
    x = jax.random.normal(k_x, (B, x_dim), jnp.float32)
    t = jax.random.uniform(k_t, (B, t_dim), jnp.float32)
    out = jax.block_until_ready(score_network_forward(x, t, packed, out_dim))
    ref = ref_forward(x, t)
    assert out.shape == (B, out_dim)
    assert jnp.allclose(out, ref, atol=1e-5, rtol=1e-5)

    # Case 2: batch not a multiple of the tile -> multi-step grid + padded rows.
    B2 = 300
    x2 = jax.random.normal(k_x2, (B2, x_dim), jnp.float32)
    t2 = jax.random.uniform(k_t2, (B2, t_dim), jnp.float32)
    out2 = jax.block_until_ready(score_network_forward(x2, t2, packed, out_dim))
    ref2 = ref_forward(x2, t2)
    assert out2.shape == (B2, out_dim)
    assert jnp.allclose(out2, ref2, atol=1e-5, rtol=1e-5)

    # Case 3: bf16 operands on the two 128-wide matmuls (f32 accumulation).
    out3 = jax.block_until_ready(
        score_network_forward(x, t, packed, out_dim, use_bf16_matmul=True))
    assert out3.shape == (B, out_dim)
    assert jnp.allclose(out3, ref, atol=5e-2)

    print("KERNEL_OK")
</pallas_src>

<mosaic_0001>
module attributes {stable_mosaic.version = 11 : i64} {
  func.func @score_network_kernel(%arg0: i32, %arg1: memref<128x8xf32, #tpu.memory_space<vmem>>, %arg2: memref<8x128xf32, #tpu.memory_space<vmem>>, %arg3: memref<128x128xf32, #tpu.memory_space<vmem>>, %arg4: memref<1x128xf32, #tpu.memory_space<vmem>>, %arg5: memref<8x128xf32, #tpu.memory_space<vmem>>, %arg6: memref<8x1xf32, #tpu.memory_space<vmem>>, %arg7: memref<8x128xf32, #tpu.memory_space<vmem>>) attributes {dimension_semantics = [#tpu.dimension_semantics<parallel>], iteration_bounds = array<i64: 1>, scalar_prefetch = 0 : i64, scratch_operands = 0 : i64, tpu.core_type = #tpu.core_type<tc>, window_params = [{transform_indices = @transform_0, window_bounds = array<i64: 128, 8>}, {pipeline_mode = #tpu.pipeline_mode<synchronous>, transform_indices = @transform_1, window_bounds = array<i64: 8, 128>}, {pipeline_mode = #tpu.pipeline_mode<synchronous>, transform_indices = @transform_2, window_bounds = array<i64: 128, 128>}, {pipeline_mode = #tpu.pipeline_mode<synchronous>, transform_indices = @transform_3, window_bounds = array<i64: 1, 128>}, {pipeline_mode = #tpu.pipeline_mode<synchronous>, transform_indices = @transform_4, window_bounds = array<i64: 8, 128>}, {pipeline_mode = #tpu.pipeline_mode<synchronous>, transform_indices = @transform_5, window_bounds = array<i64: 8, 1>}, {transform_indices = @transform_6, window_bounds = array<i64: 8, 128>}]} {
    %c0 = arith.constant 0 : index
    %c0_0 = arith.constant 0 : index
    %0 = vector.load %arg3[%c0, %c0_0] : memref<128x128xf32, #tpu.memory_space<vmem>>, vector<128x128xf32>
    %c0_1 = arith.constant 0 : index
    %c0_2 = arith.constant 0 : index
    %1 = vector.load %arg5[%c0_1, %c0_2] : memref<8x128xf32, #tpu.memory_space<vmem>>, vector<8x128xf32>
    %c0_3 = arith.constant 0 : index
    %c0_4 = arith.constant 0 : index
    %2 = vector.load %arg1[%c0_3, %c0_4] : memref<128x8xf32, #tpu.memory_space<vmem>>, vector<128x8xf32>
    %c0_5 = arith.constant 0 : index
    %c0_6 = arith.constant 0 : index
    %3 = vector.load %arg2[%c0_5, %c0_6] : memref<8x128xf32, #tpu.memory_space<vmem>>, vector<8x128xf32>
    %cst = arith.constant dense<0.000000e+00> : vector<128x128xf32>
    %4 = tpu.matmul %2, %3, %cst {dimension_numbers = #tpu.dot_dimension_numbers<[1], [0], [0], [1], [0, 0, 1, 1], [], []>} : vector<128x8xf32>, vector<8x128xf32>, vector<128x128xf32> -> vector<128x128xf32>
    %5 = math.tanh %4 : vector<128x128xf32>
    %cst_7 = arith.constant dense<0.000000e+00> : vector<128x128xf32>
    %6 = tpu.matmul %5, %0, %cst_7 {dimension_numbers = #tpu.dot_dimension_numbers<[1], [0], [0], [1], [0, 0, 1, 1], [], []>} : vector<128x128xf32>, vector<128x128xf32>, vector<128x128xf32> -> vector<128x128xf32>
    %c0_8 = arith.constant 0 : index
    %c0_9 = arith.constant 0 : index
    %7 = vector.load %arg4[%c0_8, %c0_9] : memref<1x128xf32, #tpu.memory_space<vmem>>, vector<1x128xf32>
    %8 = vector.broadcast %7 : vector<1x128xf32> to vector<128x128xf32>
    %9 = arith.addf %6, %8 : vector<128x128xf32>
    %10 = math.tanh %9 : vector<128x128xf32>
    %cst_10 = arith.constant dense<0.000000e+00> : vector<8x128xf32>
    %11 = tpu.matmul %1, %10, %cst_10 {dimension_numbers = #tpu.dot_dimension_numbers<[1], [1], [0], [0], [0, 0, 1, 0], [], []>} : vector<8x128xf32>, vector<128x128xf32>, vector<8x128xf32> -> vector<8x128xf32>
    %c0_11 = arith.constant 0 : index
    %c0_12 = arith.constant 0 : index
    %12 = vector.load %arg6[%c0_11, %c0_12] : memref<8x1xf32, #tpu.memory_space<vmem>>, vector<8x1xf32>
    %13 = vector.broadcast %12 : vector<8x1xf32> to vector<8x128xf32>
    %14 = arith.addf %11, %13 : vector<8x128xf32>
    %c0_13 = arith.constant 0 : index
    %c0_14 = arith.constant 0 : index
    %15 = vector.load %arg7[%c0_13, %c0_14] : memref<8x128xf32, #tpu.memory_space<vmem>>, vector<8x128xf32>
    tpu.vector_store %arg7[%c0_13, %c0_14], %14 {strides = array<i32>} : memref<8x128xf32, #tpu.memory_space<vmem>>, vector<8x128xf32>,
    return
  }
  func.func @transform_0(%arg0: i32) -> (i32, i32) {
    %c0_i32 = arith.constant 0 : i32
    %c0_i32_0 = arith.constant 0 : i32
    return %arg0, %c0_i32 : i32, i32
  }
  func.func @transform_1(%arg0: i32) -> (i32, i32) {
    %c0_i32 = arith.constant 0 : i32
    %c0_i32_0 = arith.constant 0 : i32
    %c0_i32_1 = arith.constant 0 : i32
    return %c0_i32, %c0_i32_0 : i32, i32
  }
  func.func @transform_2(%arg0: i32) -> (i32, i32) {
    %c0_i32 = arith.constant 0 : i32
    %c0_i32_0 = arith.constant 0 : i32
    %c0_i32_1 = arith.constant 0 : i32
    return %c0_i32, %c0_i32_0 : i32, i32
  }
  func.func @transform_3(%arg0: i32) -> (i32, i32) {
    %c0_i32 = arith.constant 0 : i32
    %c0_i32_0 = arith.constant 0 : i32
    %c0_i32_1 = arith.constant 0 : i32
    return %c0_i32, %c0_i32_0 : i32, i32
  }
  func.func @transform_4(%arg0: i32) -> (i32, i32) {
    %c0_i32 = arith.constant 0 : i32
    %c0_i32_0 = arith.constant 0 : i32
    %c0_i32_1 = arith.constant 0 : i32
    return %c0_i32, %c0_i32_0 : i32, i32
  }
  func.func @transform_5(%arg0: i32) -> (i32, i32) {
    %c0_i32 = arith.constant 0 : i32
    %c0_i32_0 = arith.constant 0 : i32
    %c0_i32_1 = arith.constant 0 : i32
    return %c0_i32, %c0_i32_0 : i32, i32
  }
  func.func @transform_6(%arg0: i32) -> (i32, i32) {
    %c0_i32 = arith.constant 0 : i32
    %c0_i32_0 = arith.constant 0 : i32
    return %c0_i32, %arg0 : i32, i32
  }
}

</mosaic_0001>

<bundles_post_ra>
// kernel: tpu_custom_call.1
= control target key start
LH: loop header
LB: loop body
LE: loop exit
PB: predicated region body
PF: predicated region fallthrough
CT: control target
= control target key end

     0   :  { %11 = vsyncpa [#allocation3], 0  ;;  %s676_s0 = inlined_call_operand.vmem [shape: f32[128,8], index: 0, kind: input, shape index: {}]   ;;  %s677_s1 = inlined_call_operand.vmem [shape: f32[8,128], index: 1, kind: input, shape index: {}]   ;;  %s678_s2 = inlined_call_operand.vmem [shape: f32[128,128], index: 2, kind: input, shape index: {}]   ;;  %s679_s3 = inlined_call_operand.vmem [shape: f32[1,128], index: 3, kind: input, shape index: {}]   ;;  %s680_s4 = inlined_call_operand.hbm [shape: f32[8,128], index: 4, kind: input, shape index: {}]   ;;  %s681_s5 = inlined_call_operand.vmem [shape: f32[8,1], index: 5, kind: input, shape index: {}]   ;;  %s682_s6 = inlined_call_operand.hbm [shape: f32[8,128], index: 6, kind: output, shape index: {}]  }
   0x1   :  { %12 = vsyncpa [#allocation4], 0  ;;  %s26_s23 = sshll.u32 %s680_s4, 4  ;;  %s484_s24 = smov [#allocation2]   ;;  %s27_s23 = int_to_ptr.hbm [resolvable:$true] %s26_s23 }
   0x2   :  { %s28_s25 = sshll.u32 %s484_s24, 4  ;;  %s29_s25 = int_to_ptr.vmem [resolvable:$true] %s28_s25 }
   0x3   :  { %31 = dma.hbm_to_vmem [thread:$0]  %s27_s23, 128, %s29_s25, [#allocation3]  }
   0x4   :  { %480 = dma.done.wait [#allocation3], 128  }
   0x5   :  { %481 = vsyncadd [#allocation3], 4294967168  ;;  %vm72_vm0 = vcmask 64512   ;;  %v71_v0 = vld [vmem:[%s677_s1] sm:$0xff]  ;;  %v56_v2 = vld [vmem:[%s676_s0 + $0x8] sm:$0xff]  ;;  %s321_s18 = sshll.u32 %s682_s6, 4  ;;  %s322_s18 = int_to_ptr.hbm [resolvable:$true] %s321_s18 }
   0x6   :  { %v55_v1 = vld [vmem:[%s676_s0] sm:$0xff]  ;;  %136 = vmatpush.msra.mxu0 %v71_v0  ;;  %v57_v3 = vld [vmem:[%s676_s0 + $0x10] sm:$0xff]  ;;  %v58_v4 = vld [vmem:[%s676_s0 + $0x18] sm:$0xff] }
   0x7   :  { %331 = vmatmul.msk.f32.vlgmr.msra.gmra.mxu0 %vm72_vm0, %v55_v1  ;;  %v59_v5 = vld [vmem:[%s676_s0 + $0x20] sm:$0xff]  ;;  %v60_v6 = vld [vmem:[%s676_s0 + $0x28] sm:$0xff]  ;;  %v61_v7 = vld [vmem:[%s676_s0 + $0x30] sm:$0xff] }
   0x8   :  { %v62_v8 = vld [vmem:[%s676_s0 + $0x38] sm:$0xff]  ;;  %v63_v9 = vld [vmem:[%s676_s0 + $0x40] sm:$0xff]  ;;  %v64_v11 = vld [vmem:[%s676_s0 + $0x48] sm:$0xff] }
   0x9   :  { %v53_v10 = vld [vmem:[%s678_s2 + $0x78] sm:$0xff]  ;;  %v52_v12 = vld [vmem:[%s678_s2 + $0x70] sm:$0xff]  ;;  %v51_v13 = vld [vmem:[%s678_s2 + $0x68] sm:$0xff] }
   0xa   :  { %206 = vmatpush.msra.mxu1 %v53_v10  ;;  %347 = vmatpush.msra.mxu3 %v53_v10  ;;  %v50_v14 = vld [vmem:[%s678_s2 + $0x60] sm:$0xff]  ;;  %v49_v15 = vld [vmem:[%s678_s2 + $0x58] sm:$0xff]  ;;  %v65_v16 = vld [vmem:[%s676_s0 + $0x50] sm:$0xff] }
   0xb   :  { %v48_v17 = vld [vmem:[%s678_s2 + $0x50] sm:$0xff]  ;;  %v47_v18 = vld [vmem:[%s678_s2 + $0x48] sm:$0xff]  ;;  %v46_v19 = vld [vmem:[%s678_s2 + $0x40] sm:$0xff] }
   0xc   :  { %207 = vmatpush.msra.mxu1 %v52_v12  ;;  %348 = vmatpush.msra.mxu3 %v52_v12  ;;  %v45_v20 = vld [vmem:[%s678_s2 + $0x38] sm:$0xff]  ;;  %v44_v22 = vld [vmem:[%s678_s2 + $0x30] sm:$0xff]  ;;  %v43_v23 = vld [vmem:[%s678_s2 + $0x28] sm:$0xff] }
   0xd   :  { %v66_v21 = vld [vmem:[%s676_s0 + $0x58] sm:$0xff]  ;;  %v42_v24 = vld [vmem:[%s678_s2 + $0x20] sm:$0xff]  ;;  %v40_v27 = vld [vmem:[%s678_s2 + $0x10] sm:$0xff] }
   0xe   :  { %208 = vmatpush.msra.mxu1 %v51_v13  ;;  %349 = vmatpush.msra.mxu3 %v51_v13  ;;  %v67_v25 = vld [vmem:[%s676_s0 + $0x60] sm:$0xff]  ;;  %v41_v26 = vld [vmem:[%s678_s2 + $0x18] sm:$0xff]  ;;  %v39_v28 = vld [vmem:[%s678_s2 + $0x8] sm:$0xff] }
   0xf   :  { %332 = vmatmul.msk.f32.gmra.mxu0 %vm72_vm0, %v56_v2  ;;  %v38_v29 = vld [vmem:[%s678_s2] sm:$0xff]  ;;  %v68_v30 = vld [vmem:[%s676_s0 + $0x68] sm:$0xff]  ;;  %v69_v31 = vld [vmem:[%s676_s0 + $0x70] sm:$0xff] }
  0x10   :  { %209 = vmatpush.msra.mxu1 %v50_v14  ;;  %350 = vmatpush.msra.mxu3 %v50_v14  ;;  %v70_v32 = vld [vmem:[%s676_s0 + $0x78] sm:$0xff]  ;;  %v649_v13 = vld [vmem:[%s679_s3] ss:$0 sm:$0xff] }
  0x12   :  { %210 = vmatpush.msra.mxu1 %v49_v15  ;;  %351 = vmatpush.msra.mxu3 %v49_v15 }
  0x14   :  { %211 = vmatpush.msra.mxu1 %v48_v17  ;;  %352 = vmatpush.msra.mxu3 %v48_v17 }
  0x16   :  { %212 = vmatpush.msra.mxu1 %v47_v18  ;;  %353 = vmatpush.msra.mxu3 %v47_v18 }
  0x17   :  { %333 = vmatmul.msk.f32.gmra.mxu0 %vm72_vm0, %v57_v3 }
  0x18   :  { %213 = vmatpush.msra.mxu1 %v46_v19  ;;  %354 = vmatpush.msra.mxu3 %v46_v19 }
  0x1a   :  { %214 = vmatpush.msra.mxu1 %v45_v20  ;;  %355 = vmatpush.msra.mxu3 %v45_v20 }
  0x1c   :  { %215 = vmatpush.msra.mxu1 %v44_v22  ;;  %356 = vmatpush.msra.mxu3 %v44_v22 }
  0x1e   :  { %216 = vmatpush.msra.mxu1 %v43_v23  ;;  %357 = vmatpush.msra.mxu3 %v43_v23 }
  0x1f   :  { %334 = vmatmul.msk.f32.gmra.mxu0 %vm72_vm0, %v58_v4 }
  0x20   :  { %217 = vmatpush.msra.mxu1 %v42_v24  ;;  %358 = vmatpush.msra.mxu3 %v42_v24 }
  0x22   :  { %218 = vmatpush.msra.mxu1 %v41_v26  ;;  %359 = vmatpush.msra.mxu3 %v41_v26 }
  0x24   :  { %219 = vmatpush.msra.mxu1 %v40_v27  ;;  %360 = vmatpush.msra.mxu3 %v40_v27 }
  0x26   :  { %220 = vmatpush.msra.mxu1 %v39_v28  ;;  %361 = vmatpush.msra.mxu3 %v39_v28 }
  0x27   :  { %335 = vmatmul.msk.f32.gmra.mxu0 %vm72_vm0, %v59_v5 }
  0x28   :  { %221 = vmatpush.msra.mxu1 %v38_v29  ;;  %362 = vmatpush.msra.mxu3 %v38_v29 }
  0x2f   :  { %336 = vmatmul.msk.f32.gmra.mxu0 %vm72_vm0, %v60_v6 }
  0x37   :  { %337 = vmatmul.msk.f32.gmra.mxu0 %vm72_vm0, %v61_v7 }
  0x3f   :  { %338 = vmatmul.msk.f32.gmra.mxu0 %vm72_vm0, %v62_v8 }
  0x47   :  { %339 = vmatmul.msk.f32.gmra.mxu0 %vm72_vm0, %v63_v9 }
  0x4f   :  { %340 = vmatmul.msk.f32.gmra.mxu0 %vm72_vm0, %v64_v11 }
  0x57   :  { %341 = vmatmul.msk.f32.gmra.mxu0 %vm72_vm0, %v65_v16 }
  0x5f   :  { %342 = vmatmul.msk.f32.gmra.mxu0 %vm72_vm0, %v66_v21 }
  0x67   :  { %343 = vmatmul.msk.f32.gmra.mxu0 %vm72_vm0, %v67_v25 }
  0x6f   :  { %344 = vmatmul.msk.f32.gmra.mxu0 %vm72_vm0, %v68_v30 }
  0x77   :  { %345 = vmatmul.msk.f32.gmra.mxu0 %vm72_vm0, %v69_v31 }
  0x7f   :  { %346 = vmatmul.msk.f32.gmra.mxu0 %vm72_vm0, %v70_v32 }
  0x84   :  { %v138_v33 = vpop.f32.mrf.mxu0 }
  0x85   :  { %368 = vtanh.f32 %v138_v33 }
  0x8b   :  { %v369_v34 = vpop.eup %368 }
  0x8c   :  { %v141_v35 = vpop.f32.mrf.mxu0  ;;  %222 = vmatmul.f32.vlgmr.msra.gmra.mxu1 %v369_v34 }
  0x8d   :  { %370 = vtanh.f32 %v141_v35 }
  0x93   :  { %v371_v36 = vpop.eup %370 }
  0x94   :  { %v144_v37 = vpop.f32.mrf.mxu0  ;;  %225 = vmatmul.f32.gmra.mxu1 %v371_v36 }
  0x95   :  { %372 = vtanh.f32 %v144_v37 }
  0x9b   :  { %v373_v38 = vpop.eup %372 }
  0x9c   :  { %v147_v39 = vpop.f32.mrf.mxu0  ;;  %228 = vmatmul.f32.gmra.mxu1 %v373_v38  ;;  %v287_v38 = vld [vmem:[%s681_s5] sm:$0xff]  ;;  %s486_s5 = smov [#allocation5]  }
  0x9d   :  { %374 = vtanh.f32 %v147_v39  ;;  %v485_v39 = vmov 0   ;;  %s319_s15 = sshll.u32 %s486_s5, 4  ;;  %s320_s15 = int_to_ptr.vmem [resolvable:$true] %s319_s15 }
  0x9e   :  { %366 = vset.pattern.permute.xlu0 %v485_v39 }
  0x9f   :  { %290 = vperm.xlu0 %366, %v287_v38  }
  0xa3   :  { %v375_v40 = vpop.eup %374 }
  0xa4   :  { %v150_v41 = vpop.f32.mrf.mxu0  ;;  %231 = vmatmul.f32.gmra.mxu1 %v375_v40 }
  0xa5   :  { %376 = vtanh.f32 %v150_v41 }
  0xab   :  { %v377_v42 = vpop.eup %376 }
  0xac   :  { %v153_v43 = vpop.f32.mrf.mxu0  ;;  %234 = vmatmul.f32.gmra.mxu1 %v377_v42 }
  0xad   :  { %378 = vtanh.f32 %v153_v43 }
  0xb3   :  { %v379_v44 = vpop.eup %378 }
  0xb4   :  { %v156_v45 = vpop.f32.mrf.mxu0  ;;  %237 = vmatmul.f32.gmra.mxu1 %v379_v44 }
  0xb5   :  { %380 = vtanh.f32 %v156_v45 }
  0xbb   :  { %v381_v46 = vpop.eup %380 }
  0xbc   :  { %v159_v47 = vpop.f32.mrf.mxu0  ;;  %240 = vmatmul.f32.gmra.mxu1 %v381_v46 }
  0xbd   :  { %382 = vtanh.f32 %v159_v47 }
  0xc3   :  { %v383_v48 = vpop.eup %382 }
  0xc4   :  { %v162_v49 = vpop.f32.mrf.mxu0  ;;  %243 = vmatmul.f32.gmra.mxu1 %v383_v48 }
  0xc5   :  { %384 = vtanh.f32 %v162_v49 }
  0xcb   :  { %v385_v50 = vpop.eup %384 }
  0xcc   :  { %v165_v51 = vpop.f32.mrf.mxu0  ;;  %246 = vmatmul.f32.gmra.mxu1 %v385_v50 }
  0xcd   :  { %386 = vtanh.f32 %v165_v51 }
  0xd3   :  { %v387_v52 = vpop.eup %386 }
  0xd4   :  { %v168_v53 = vpop.f32.mrf.mxu0  ;;  %249 = vmatmul.f32.vlgmr.msra.gmra.mxu3 %v387_v52  ;;  %v54_v52 = vld [vmem:[#allocation2] sm:$0xff] }
  0xd5   :  { %388 = vtanh.f32 %v168_v53 }
  0xdb   :  { %v389_v54 = vpop.eup %388 }
  0xdc   :  { %v171_v55 = vpop.f32.mrf.mxu0  ;;  %252 = vmatmul.f32.gmra.mxu3 %v389_v54 }
  0xdd   :  { %390 = vtanh.f32 %v171_v55 }
  0xe3   :  { %v391_v56 = vpop.eup %390 }
  0xe4   :  { %v174_v57 = vpop.f32.mrf.mxu0  ;;  %255 = vmatmul.f32.gmra.mxu3 %v391_v56 }
  0xe5   :  { %392 = vtanh.f32 %v174_v57 }
  0xeb   :  { %v393_v58 = vpop.eup %392 }
  0xec   :  { %v177_v59 = vpop.f32.mrf.mxu0  ;;  %258 = vmatmul.f32.gmra.mxu3 %v393_v58 }
  0xed   :  { %394 = vtanh.f32 %v177_v59 }
  0xf3   :  { %v395_v60 = vpop.eup %394 }
  0xf4   :  { %v180_v61 = vpop.f32.mrf.mxu0  ;;  %261 = vmatmul.f32.gmra.mxu3 %v395_v60 }
  0xf5   :  { %396 = vtanh.f32 %v180_v61 }
  0xfb   :  { %v397_v62 = vpop.eup %396 }
  0xfc   :  { %v183_v63 = vpop.f32.mrf.mxu0  ;;  %264 = vmatmul.f32.gmra.mxu3 %v397_v62 }
  0xfd   :  { %398 = vtanh.f32 %v183_v63 }
 0x103   :  { %v399_v0 = vpop.eup %398 }
 0x104   :  { %267 = vmatmul.f32.gmra.mxu3 %v399_v0 }
 0x109   :  { %v640_v1 = vpop.f32.mrf.mxu1 }
 0x10a   :  { %v224_v48 = vadd.f32 %v649_v13, %v640_v1 }
 0x111   :  { %v642_v3 = vpop.f32.mrf.mxu1  ;;  %v291_v53 = vpop.permute.xlu0 %290 }
 0x112   :  { %v227_v46 = vadd.f32 %v649_v13, %v642_v3 }
 0x119   :  { %v644_v5 = vpop.f32.mrf.mxu1 }
 0x11a   :  { %v230_v44 = vadd.f32 %v649_v13, %v644_v5 }
 0x121   :  { %v232_v7 = vpop.f32.mrf.mxu1 }
 0x122   :  { %v233_v42 = vadd.f32 %v649_v13, %v232_v7 }
 0x129   :  { %v235_v9 = vpop.f32.mrf.mxu1 }
 0x12a   :  { %v236_v40 = vadd.f32 %v649_v13, %v235_v9 }
 0x131   :  { %v238_v12 = vpop.f32.mrf.mxu1 }
 0x132   :  { %v239_v36 = vadd.f32 %v649_v13, %v238_v12 }
 0x139   :  { %v241_v17 = vpop.f32.mrf.mxu1 }
 0x13a   :  { %v242_v34 = vadd.f32 %v649_v13, %v241_v17 }
 0x141   :  { %v244_v22 = vpop.f32.mrf.mxu1 }
 0x142   :  { %v245_v32 = vadd.f32 %v649_v13, %v244_v22 }
 0x149   :  { %v247_v28 = vpop.f32.mrf.mxu1 }
 0x14a   :  { %v248_v30 = vadd.f32 %v649_v13, %v247_v28 }
 0x157   :  { %v250_v2 = vpop.f32.mrf.mxu3 }
 0x158   :  { %v251_v27 = vadd.f32 %v649_v13, %v250_v2 }
 0x15f   :  { %v253_v4 = vpop.f32.mrf.mxu3 }
 0x160   :  { %v254_v25 = vadd.f32 %v649_v13, %v253_v4 }
 0x167   :  { %v256_v6 = vpop.f32.mrf.mxu3 }
 0x168   :  { %v257_v23 = vadd.f32 %v649_v13, %v256_v6 }
 0x16f   :  { %v259_v8 = vpop.f32.mrf.mxu3 }
 0x170   :  { %v260_v20 = vadd.f32 %v649_v13, %v259_v8 }
 0x177   :  { %v262_v10 = vpop.f32.mrf.mxu3 }
 0x178   :  { %v263_v18 = vadd.f32 %v649_v13, %v262_v10 }
 0x17f   :  { %v265_v11 = vpop.f32.mrf.mxu3 }
 0x180   :  { %v266_v16 = vadd.f32 %v649_v13, %v265_v11 }
 0x187   :  { %v268_v14 = vpop.f32.mrf.mxu3 }
 0x188   :  { %v269_v15 = vadd.f32 %v649_v13, %v268_v14 }
 0x18a   :  { %400 = vtanh.f32 %v269_v15 }
 0x18b   :  { %402 = vtanh.f32 %v266_v16 }
 0x18c   :  { %404 = vtanh.f32 %v263_v18 }
 0x18d   :  { %406 = vtanh.f32 %v260_v20 }
 0x18e   :  { %408 = vtanh.f32 %v257_v23 }
 0x18f   :  { %410 = vtanh.f32 %v254_v25 }
 0x190   :  { %v401_v19 = vpop.eup %400  ;;  %412 = vtanh.f32 %v251_v27 }
 0x191   :  { %293 = vmatpush.xpose.msra.mxu2 %v401_v19  ;;  %v403_v21 = vpop.eup %402  ;;  %414 = vtanh.f32 %v248_v30 }
 0x192   :  { %v405_v24 = vpop.eup %404  ;;  %416 = vtanh.f32 %v245_v32 }
 0x193   :  { %v407_v26 = vpop.eup %406  ;;  %418 = vtanh.f32 %v242_v34 }
 0x194   :  { %v409_v29 = vpop.eup %408  ;;  %420 = vtanh.f32 %v239_v36 }
 0x195   :  { %294 = vmatpush.xpose.msra.mxu2 %v403_v21  ;;  %v411_v31 = vpop.eup %410  ;;  %422 = vtanh.f32 %v236_v40 }
 0x196   :  { %v413_v33 = vpop.eup %412  ;;  %424 = vtanh.f32 %v233_v42 }
 0x197   :  { %v415_v35 = vpop.eup %414  ;;  %426 = vtanh.f32 %v230_v44 }
 0x198   :  { %v417_v37 = vpop.eup %416  ;;  %428 = vtanh.f32 %v227_v46 }
 0x199   :  { %295 = vmatpush.xpose.msra.mxu2 %v405_v24  ;;  %v419_v41 = vpop.eup %418  ;;  %430 = vtanh.f32 %v224_v48 }
 0x19a   :  { %v421_v43 = vpop.eup %420 }
 0x19b   :  { %v423_v45 = vpop.eup %422 }
 0x19c   :  { %v425_v47 = vpop.eup %424 }
 0x19d   :  { %296 = vmatpush.xpose.msra.mxu2 %v407_v26  ;;  %v427_v49 = vpop.eup %426 }
 0x19e   :  { %v429_v50 = vpop.eup %428 }
 0x19f   :  { %v431_v51 = vpop.eup %430 }
 0x1a1   :  { %297 = vmatpush.xpose.msra.mxu2 %v409_v29 }
 0x1a5   :  { %298 = vmatpush.xpose.msra.mxu2 %v411_v31 }
 0x1a9   :  { %299 = vmatpush.xpose.msra.mxu2 %v413_v33 }
 0x1ad   :  { %300 = vmatpush.xpose.msra.mxu2 %v415_v35 }
 0x1b1   :  { %301 = vmatpush.xpose.msra.mxu2 %v417_v37 }
 0x1b5   :  { %302 = vmatpush.xpose.msra.mxu2 %v419_v41 }
 0x1b9   :  { %303 = vmatpush.xpose.msra.mxu2 %v421_v43 }
 0x1bd   :  { %304 = vmatpush.xpose.msra.mxu2 %v423_v45 }
 0x1c1   :  { %305 = vmatpush.xpose.msra.mxu2 %v425_v47 }
 0x1c5   :  { %306 = vmatpush.xpose.msra.mxu2 %v427_v49 }
 0x1c9   :  { %307 = vmatpush.xpose.msra.mxu2 %v429_v50 }
 0x1cd   :  { %308 = vmatpush.xpose.msra.mxu2 %v431_v51 }
 0x1d0   :  { %309 = vmatmul.f32.vlgmr.msra.gmra.mxu2 %v54_v52 }
 0x253   :  { %v310_v54 = vpop.f32.mrf.mxu2 }
 0x254   :  { %v311_v55 = vadd.f32 %v310_v54, %v291_v53 }
 0x256   :  { %313 = vst [vmem:[#allocation5] sm:$0xff] %v311_v55 }
 0x257   :  { %324 = dma.vmem_to_hbm [thread:$0]  %s320_s15, 128, %s322_s18, [#allocation4]  }
 0x258   :  { %482 = dma.done.wait [#allocation4], 128  }
 0x259   :  { %483 = vsyncadd [#allocation4], 4294967168 }
 0x25a   :  { %329 = vsyncpa [#allocation3], 1 }
 0x25b   :  { %330 = vsyncpa [#allocation4], 1 }

</bundles_post_ra>
